<compile_context>
chip_gen: v6e
topology: v6e:2x2x1
jax: 0.10.0
libtpu: 0.0.40
codegen_flags: <defaults>
</compile_context>

<pallas_src>
import math

import jax
import jax.numpy as jnp
from jax.experimental import pallas as pl
from jax.experimental.pallas import tpu as pltpu

# ----------------------- small but structurally faithful config -----------------------
INPUT_DIM = 48
D_MODEL = 32
NHEAD = 4
DHEAD = D_MODEL // NHEAD
NUM_LAYERS = 2
DIM_FF = 64
EPS = 1e-5            # PyTorch LayerNorm default eps
NEG_INF = -1e30       # additive bias for padded keys (kept in f32; not representable in bf16)


def _layernorm(x, gamma, beta):
    mu = jnp.mean(x, axis=-1, keepdims=True)
    var = jnp.mean((x - mu) ** 2, axis=-1, keepdims=True)
    return (x - mu) * jax.lax.rsqrt(var + EPS) * gamma + beta


# --------------------------------- fused kernel ----------------------------------------
def fused_encoder_kernel(x_ref, mask_ref, pw_ref, pb_ref,
                         wqkv_ref, bqkv_ref, wo_ref, bo_ref,
                         g1_ref, be1_ref,
                         w1_ref, b1_ref, w2_ref, b2_ref,
                         g2_ref, be2_ref,
                         o_ref):
    # One grid step == one sequence of the batch.
    #   x_ref:    (1, S, Din)  f32
    #   mask_ref: (1, 1, S)    int32 (1 = valid key, 0 = padded key)
    #   weights:  stacked over layers; matmul operands bf16, bias/LN params f32
    #   o_ref:    (1, S, D)    f32
    scale = 1.0 / math.sqrt(DHEAD)

    # Per-sequence key-padding bias (1, S) f32, computed once per grid step and reused
    # by every layer/head (replaces the old resident (B*S, B*S) block-diagonal bias).
    key_bias = jnp.where(mask_ref[0] != 0, 0.0, NEG_INF).astype(jnp.float32)      # (1, S)

    # --- input projection (dropout = identity at inference) ---
    x = x_ref[0].astype(jnp.bfloat16)                                             # (S, Din)
    h = jnp.dot(x, pw_ref[...],
                preferred_element_type=jnp.float32) + pb_ref[...]                 # (S, D) f32

    def layer_body(li, h):
        hb = h.astype(jnp.bfloat16)

        # ---------------- fused QKV projection: one (S,D)x(D,3D) matmul ----------------
        qkv = jnp.dot(hb, wqkv_ref[li],
                      preferred_element_type=jnp.float32) + bqkv_ref[li]          # (S, 3D)

        # ---------------- multi-head attention; heads sliced from lanes ----------------
        ctx_heads = []
        for hd in range(NHEAD):
            q = qkv[:, hd * DHEAD:(hd + 1) * DHEAD]
            k = qkv[:, D_MODEL + hd * DHEAD:D_MODEL + (hd + 1) * DHEAD]
            v = qkv[:, 2 * D_MODEL + hd * DHEAD:2 * D_MODEL + (hd + 1) * DHEAD]
            s = jax.lax.dot_general(q.astype(jnp.bfloat16), k.astype(jnp.bfloat16),
                                    (((1,), (1,)), ((), ())),
                                    preferred_element_type=jnp.float32)           # (S, S)
            s = s * scale + key_bias                                              # f32 path
            s = s - jnp.max(s, axis=-1, keepdims=True)
            e = jnp.exp(s)                                                        # EUP, f32
            p = e * pl.reciprocal(jnp.sum(e, axis=-1, keepdims=True), approx=True)
            ctx_heads.append(jnp.dot(p.astype(jnp.bfloat16), v.astype(jnp.bfloat16),
                                     preferred_element_type=jnp.float32))         # (S, dh)
        ctx = jnp.concatenate(ctx_heads, axis=-1)                                 # (S, D)

        # ---------------- single fused output projection ----------------
        attn = jnp.dot(ctx.astype(jnp.bfloat16), wo_ref[li],
                       preferred_element_type=jnp.float32) + bo_ref[li]           # (S, D)
        h = _layernorm(h + attn, g1_ref[li], be1_ref[li])

        # ---------------- feed-forward ----------------
        f = jnp.dot(h.astype(jnp.bfloat16), w1_ref[li],
                    preferred_element_type=jnp.float32) + b1_ref[li]              # (S, F)
        f = jnp.maximum(f, 0.0)                                                   # ReLU, f32
        f = jnp.dot(f.astype(jnp.bfloat16), w2_ref[li],
                    preferred_element_type=jnp.float32) + b2_ref[li]              # (S, D)
        return _layernorm(h + f, g2_ref[li], be2_ref[li])

    h = jax.lax.fori_loop(0, NUM_LAYERS, layer_body, h)
    o_ref[0] = h


# --------------------------------- parameter setup -------------------------------------
def init_params(key):
    def rnd(k, shape, fan_in):
        w = jax.random.normal(k, shape, dtype=jnp.float32) * (1.0 / math.sqrt(fan_in))
        return w.astype(jnp.bfloat16)        # matmul operands live in bf16

    L, D, F = NUM_LAYERS, D_MODEL, DIM_FF
    ks = jax.random.split(key, 5)
    return {
        # input projection, pre-transposed: (Din, D) so the kernel does x @ W
        "proj_w": rnd(ks[0], (INPUT_DIM, D), INPUT_DIM),
        "proj_b": jnp.zeros((1, D), jnp.float32),
        # fused QKV projection; lanes ordered [q_h0..q_h3 | k_h0..k_h3 | v_h0..v_h3]
        "wqkv": rnd(ks[1], (L, D, 3 * D), D),
        "bqkv": jnp.zeros((L, 1, 3 * D), jnp.float32),
        # fused attention output projection
        "wo": rnd(ks[2], (L, D, D), D),
        "bo": jnp.zeros((L, 1, D), jnp.float32),
        "ln1_g": jnp.ones((L, 1, D), jnp.float32),
        "ln1_b": jnp.zeros((L, 1, D), jnp.float32),
        # feed-forward
        "w1": rnd(ks[3], (L, D, F), D),
        "b1": jnp.zeros((L, 1, F), jnp.float32),
        "w2": rnd(ks[4], (L, F, D), F),
        "b2": jnp.zeros((L, 1, D), jnp.float32),
        "ln2_g": jnp.ones((L, 1, D), jnp.float32),
        "ln2_b": jnp.zeros((L, 1, D), jnp.float32),
    }


# ------------------------------------ forward ------------------------------------------
def eeg_transformer_forward(params, x, mask):
    B, S, Din = x.shape
    mask3 = mask.astype(jnp.int32).reshape(B, 1, S)

    batched = (x.astype(jnp.float32), mask3)
    weights = (params["proj_w"], params["proj_b"],
               params["wqkv"], params["bqkv"], params["wo"], params["bo"],
               params["ln1_g"], params["ln1_b"],
               params["w1"], params["b1"], params["w2"], params["b2"],
               params["ln2_g"], params["ln2_b"])

    def resident(a):
        # whole array resident in VMEM; same block index every grid step (no re-fetch)
        return pl.BlockSpec(a.shape, lambda b, n=a.ndim: (0,) * n)

    in_specs = [pl.BlockSpec((1, S, Din), lambda b: (b, 0, 0)),
                pl.BlockSpec((1, 1, S), lambda b: (b, 0, 0))]
    in_specs += [resident(a) for a in weights]
    out_spec = pl.BlockSpec((1, S, D_MODEL), lambda b: (b, 0, 0))

    # Advisory cost hint for the XLA scheduler around the custom call.
    flops_seq = 2 * S * INPUT_DIM * D_MODEL + NUM_LAYERS * (
        2 * S * D_MODEL * 3 * D_MODEL            # fused QKV projection
        + 2 * NHEAD * S * S * DHEAD * 2          # scores + ctx
        + 2 * S * D_MODEL * D_MODEL              # output projection
        + 2 * 2 * S * D_MODEL * DIM_FF)          # feed-forward
    bytes_accessed = sum(int(a.size) * a.dtype.itemsize for a in batched + weights)
    bytes_accessed += B * S * D_MODEL * 4
    cost = pl.CostEstimate(flops=B * flops_seq,
                           transcendentals=B * NUM_LAYERS * NHEAD * S * S,
                           bytes_accessed=bytes_accessed)

    out = pl.pallas_call(
        fused_encoder_kernel,
        out_shape=jax.ShapeDtypeStruct((B, S, D_MODEL), jnp.float32),
        grid=(B,),
        in_specs=in_specs,
        out_specs=out_spec,
        compiler_params=pltpu.CompilerParams(
            dimension_semantics=("parallel",),
            vmem_limit_bytes=32 * 1024 * 1024),
        cost_estimate=cost,
    )(*batched, *weights)
    return out


# -------------------------------------- main --------------------------------------------
if __name__ == "__main__":
    key = jax.random.PRNGKey(0)
    pk, xk = jax.random.split(key)
    params = init_params(pk)

    B, S = 2, 8
    x = jax.random.normal(xk, (B, S, INPUT_DIM), dtype=jnp.float32)
    # second sequence has its last two positions padded
    mask = jnp.ones((B, S), dtype=jnp.int32).at[1, -2:].set(0)

    out = eeg_transformer_forward(params, x, mask)
    out = jax.block_until_ready(out)

    assert out.shape == (B, S, D_MODEL)
    assert bool(jnp.all(jnp.isfinite(out)))
    print("KERNEL_OK")
</pallas_src>

<mosaic_0001>
module attributes {stable_mosaic.version = 11 : i64} {
  func.func @fused_encoder_kernel(%arg0: i32, %arg1: memref<1x8x48xf32, #tpu.memory_space<vmem>>, %arg2: memref<1x1x8xi32, #tpu.memory_space<vmem>>, %arg3: memref<48x32xbf16, #tpu.memory_space<vmem>>, %arg4: memref<1x32xf32, #tpu.memory_space<vmem>>, %arg5: memref<2x32x96xbf16, #tpu.memory_space<vmem>>, %arg6: memref<2x1x96xf32, #tpu.memory_space<vmem>>, %arg7: memref<2x32x32xbf16, #tpu.memory_space<vmem>>, %arg8: memref<2x1x32xf32, #tpu.memory_space<vmem>>, %arg9: memref<2x1x32xf32, #tpu.memory_space<vmem>>, %arg10: memref<2x1x32xf32, #tpu.memory_space<vmem>>, %arg11: memref<2x32x64xbf16, #tpu.memory_space<vmem>>, %arg12: memref<2x1x64xf32, #tpu.memory_space<vmem>>, %arg13: memref<2x64x32xbf16, #tpu.memory_space<vmem>>, %arg14: memref<2x1x32xf32, #tpu.memory_space<vmem>>, %arg15: memref<2x1x32xf32, #tpu.memory_space<vmem>>, %arg16: memref<2x1x32xf32, #tpu.memory_space<vmem>>, %arg17: memref<1x8x32xf32, #tpu.memory_space<vmem>>) attributes {dimension_semantics = [#tpu.dimension_semantics<parallel>], iteration_bounds = array<i64: 2>, scalar_prefetch = 0 : i64, scratch_operands = 0 : i64, tpu.core_type = #tpu.core_type<tc>, window_params = [{transform_indices = @transform_0, window_bounds = array<i64: 1, 8, 48>}, {transform_indices = @transform_1, window_bounds = array<i64: 1, 1, 8>}, {pipeline_mode = #tpu.pipeline_mode<synchronous>, transform_indices = @transform_2, window_bounds = array<i64: 48, 32>}, {pipeline_mode = #tpu.pipeline_mode<synchronous>, transform_indices = @transform_3, window_bounds = array<i64: 1, 32>}, {pipeline_mode = #tpu.pipeline_mode<synchronous>, transform_indices = @transform_4, window_bounds = array<i64: 2, 32, 96>}, {pipeline_mode = #tpu.pipeline_mode<synchronous>, transform_indices = @transform_5, window_bounds = array<i64: 2, 1, 96>}, {pipeline_mode = #tpu.pipeline_mode<synchronous>, transform_indices = @transform_6, window_bounds = array<i64: 2, 32, 32>}, {pipeline_mode = #tpu.pipeline_mode<synchronous>, transform_indices = @transform_7, window_bounds = array<i64: 2, 1, 32>}, {pipeline_mode = #tpu.pipeline_mode<synchronous>, transform_indices = @transform_8, window_bounds = array<i64: 2, 1, 32>}, {pipeline_mode = #tpu.pipeline_mode<synchronous>, transform_indices = @transform_9, window_bounds = array<i64: 2, 1, 32>}, {pipeline_mode = #tpu.pipeline_mode<synchronous>, transform_indices = @transform_10, window_bounds = array<i64: 2, 32, 64>}, {pipeline_mode = #tpu.pipeline_mode<synchronous>, transform_indices = @transform_11, window_bounds = array<i64: 2, 1, 64>}, {pipeline_mode = #tpu.pipeline_mode<synchronous>, transform_indices = @transform_12, window_bounds = array<i64: 2, 64, 32>}, {pipeline_mode = #tpu.pipeline_mode<synchronous>, transform_indices = @transform_13, window_bounds = array<i64: 2, 1, 32>}, {pipeline_mode = #tpu.pipeline_mode<synchronous>, transform_indices = @transform_14, window_bounds = array<i64: 2, 1, 32>}, {pipeline_mode = #tpu.pipeline_mode<synchronous>, transform_indices = @transform_15, window_bounds = array<i64: 2, 1, 32>}, {transform_indices = @transform_16, window_bounds = array<i64: 1, 8, 32>}]} {
    %c0 = arith.constant 0 : index
    %c0_0 = arith.constant 0 : index
    %c0_1 = arith.constant 0 : index
    %0 = vector.load %arg2[%c0, %c0_0, %c0_1] : memref<1x1x8xi32, #tpu.memory_space<vmem>>, vector<1x1x8xi32>
    %1 = vector.shape_cast %0 : vector<1x1x8xi32> to vector<1x8xi32>
    %c0_i32 = arith.constant 0 : i32
    %2 = vector.broadcast %c0_i32 : i32 to vector<1x8xi32>
    %3 = arith.cmpi ne, %1, %2 : vector<1x8xi32>
    %cst = arith.constant 0.000000e+00 : f32
    %cst_2 = arith.constant -1.000000e+30 : f32
    %4 = vector.broadcast %cst : f32 to vector<1x8xf32>
    %5 = vector.broadcast %cst_2 : f32 to vector<1x8xf32>
    %6 = arith.select %3, %4, %5 : vector<1x8xi1>, vector<1x8xf32>
    %c0_3 = arith.constant 0 : index
    %c0_4 = arith.constant 0 : index
    %c0_5 = arith.constant 0 : index
    %7 = vector.load %arg1[%c0_3, %c0_4, %c0_5] : memref<1x8x48xf32, #tpu.memory_space<vmem>>, vector<1x8x48xf32>
    %8 = vector.shape_cast %7 : vector<1x8x48xf32> to vector<8x48xf32>
    %9 = arith.truncf %8 : vector<8x48xf32> to vector<8x48xbf16>
    %c0_6 = arith.constant 0 : index
    %c0_7 = arith.constant 0 : index
    %10 = vector.load %arg3[%c0_6, %c0_7] : memref<48x32xbf16, #tpu.memory_space<vmem>>, vector<48x32xbf16>
    %cst_8 = arith.constant dense<0.000000e+00> : vector<8x32xf32>
    %11 = tpu.matmul %9, %10, %cst_8 {dimension_numbers = #tpu.dot_dimension_numbers<[1], [0], [0], [1], [0, 0, 1, 1], [], []>} : vector<8x48xbf16>, vector<48x32xbf16>, vector<8x32xf32> -> vector<8x32xf32>
    %c0_9 = arith.constant 0 : index
    %c0_10 = arith.constant 0 : index
    %12 = vector.load %arg4[%c0_9, %c0_10] : memref<1x32xf32, #tpu.memory_space<vmem>>, vector<1x32xf32>
    %13 = vector.broadcast %12 : vector<1x32xf32> to vector<8x32xf32>
    %14 = arith.addf %11, %13 : vector<8x32xf32>
    %c0_i32_11 = arith.constant 0 : i32
    %c2_i32 = arith.constant 2 : i32
    %15 = arith.addi %c0_i32_11, %c2_i32 : i32
    %c1_i32 = arith.constant 1 : i32
    %16 = scf.for %arg18 = %c0_i32_11 to %15 step %c1_i32 iter_args(%arg19 = %14) -> (vector<8x32xf32>)  : i32 {
      %20 = arith.truncf %arg19 : vector<8x32xf32> to vector<8x32xbf16>
      %21 = arith.index_cast %arg18 : i32 to index
      %c0_16 = arith.constant 0 : index
      %c0_17 = arith.constant 0 : index
      %22 = vector.load %arg5[%21, %c0_16, %c0_17] : memref<2x32x96xbf16, #tpu.memory_space<vmem>>, vector<1x32x96xbf16>
      %23 = vector.shape_cast %22 : vector<1x32x96xbf16> to vector<32x96xbf16>
      %cst_18 = arith.constant dense<0.000000e+00> : vector<8x96xf32>
      %24 = tpu.matmul %20, %23, %cst_18 {dimension_numbers = #tpu.dot_dimension_numbers<[1], [0], [0], [1], [0, 0, 1, 1], [], []>} : vector<8x32xbf16>, vector<32x96xbf16>, vector<8x96xf32> -> vector<8x96xf32>
      %25 = arith.index_cast %arg18 : i32 to index
      %c0_19 = arith.constant 0 : index
      %c0_20 = arith.constant 0 : index
      %26 = vector.load %arg6[%25, %c0_19, %c0_20] : memref<2x1x96xf32, #tpu.memory_space<vmem>>, vector<1x1x96xf32>
      %27 = vector.shape_cast %26 : vector<1x1x96xf32> to vector<1x96xf32>
      %28 = vector.broadcast %27 : vector<1x96xf32> to vector<8x96xf32>
      %29 = arith.addf %24, %28 : vector<8x96xf32>
      %30 = vector.extract_strided_slice %29 {offsets = [0, 0], sizes = [8, 8], strides = [1, 1]} : vector<8x96xf32> to vector<8x8xf32>
      %31 = vector.extract_strided_slice %29 {offsets = [0, 32], sizes = [8, 8], strides = [1, 1]} : vector<8x96xf32> to vector<8x8xf32>
      %32 = vector.extract_strided_slice %29 {offsets = [0, 64], sizes = [8, 8], strides = [1, 1]} : vector<8x96xf32> to vector<8x8xf32>
      %33 = arith.truncf %30 : vector<8x8xf32> to vector<8x8xbf16>
      %34 = arith.truncf %31 : vector<8x8xf32> to vector<8x8xbf16>
      %cst_21 = arith.constant dense<0.000000e+00> : vector<8x8xf32>
      %35 = tpu.matmul %33, %34, %cst_21 {dimension_numbers = #tpu.dot_dimension_numbers<[1], [1], [0], [0], [0, 0, 1, 0], [], []>} : vector<8x8xbf16>, vector<8x8xbf16>, vector<8x8xf32> -> vector<8x8xf32>
      %cst_22 = arith.constant 0.353553385 : f32
      %36 = vector.broadcast %cst_22 : f32 to vector<8x8xf32>
      %37 = arith.mulf %35, %36 : vector<8x8xf32>
      %38 = vector.broadcast %6 : vector<1x8xf32> to vector<8x8xf32>
      %39 = arith.addf %37, %38 : vector<8x8xf32>
      %cst_23 = arith.constant dense<0xFF800000> : vector<8xf32>
      %40 = vector.multi_reduction <maximumf>, %39, %cst_23 [1] : vector<8x8xf32> to vector<8xf32>
      %41 = vector.shape_cast %40 : vector<8xf32> to vector<8x1xf32>
      %42 = vector.broadcast %41 : vector<8x1xf32> to vector<8x8xf32>
      %43 = arith.subf %39, %42 : vector<8x8xf32>
      %44 = math.exp %43 : vector<8x8xf32>
      %cst_24 = arith.constant dense<0.000000e+00> : vector<8xf32>
      %45 = vector.multi_reduction <add>, %44, %cst_24 [1] : vector<8x8xf32> to vector<8xf32>
      %46 = vector.shape_cast %45 : vector<8xf32> to vector<8x1xf32>
      %47 = tpu.reciprocal %46 {approx = true} : vector<8x1xf32> -> vector<8x1xf32>
      %48 = vector.broadcast %47 : vector<8x1xf32> to vector<8x8xf32>
      %49 = arith.mulf %44, %48 : vector<8x8xf32>
      %50 = arith.truncf %49 : vector<8x8xf32> to vector<8x8xbf16>
      %51 = arith.truncf %32 : vector<8x8xf32> to vector<8x8xbf16>
      %cst_25 = arith.constant dense<0.000000e+00> : vector<8x8xf32>
      %52 = tpu.matmul %50, %51, %cst_25 {dimension_numbers = #tpu.dot_dimension_numbers<[1], [0], [0], [1], [0, 0, 1, 1], [], []>} : vector<8x8xbf16>, vector<8x8xbf16>, vector<8x8xf32> -> vector<8x8xf32>
      %53 = vector.extract_strided_slice %29 {offsets = [0, 8], sizes = [8, 8], strides = [1, 1]} : vector<8x96xf32> to vector<8x8xf32>
      %54 = vector.extract_strided_slice %29 {offsets = [0, 40], sizes = [8, 8], strides = [1, 1]} : vector<8x96xf32> to vector<8x8xf32>
      %55 = vector.extract_strided_slice %29 {offsets = [0, 72], sizes = [8, 8], strides = [1, 1]} : vector<8x96xf32> to vector<8x8xf32>
      %56 = arith.truncf %53 : vector<8x8xf32> to vector<8x8xbf16>
      %57 = arith.truncf %54 : vector<8x8xf32> to vector<8x8xbf16>
      %cst_26 = arith.constant dense<0.000000e+00> : vector<8x8xf32>
      %58 = tpu.matmul %56, %57, %cst_26 {dimension_numbers = #tpu.dot_dimension_numbers<[1], [1], [0], [0], [0, 0, 1, 0], [], []>} : vector<8x8xbf16>, vector<8x8xbf16>, vector<8x8xf32> -> vector<8x8xf32>
      %cst_27 = arith.constant 0.353553385 : f32
      %59 = vector.broadcast %cst_27 : f32 to vector<8x8xf32>
      %60 = arith.mulf %58, %59 : vector<8x8xf32>
      %61 = vector.broadcast %6 : vector<1x8xf32> to vector<8x8xf32>
      %62 = arith.addf %60, %61 : vector<8x8xf32>
      %cst_28 = arith.constant dense<0xFF800000> : vector<8xf32>
      %63 = vector.multi_reduction <maximumf>, %62, %cst_28 [1] : vector<8x8xf32> to vector<8xf32>
      %64 = vector.shape_cast %63 : vector<8xf32> to vector<8x1xf32>
      %65 = vector.broadcast %64 : vector<8x1xf32> to vector<8x8xf32>
      %66 = arith.subf %62, %65 : vector<8x8xf32>
      %67 = math.exp %66 : vector<8x8xf32>
      %cst_29 = arith.constant dense<0.000000e+00> : vector<8xf32>
      %68 = vector.multi_reduction <add>, %67, %cst_29 [1] : vector<8x8xf32> to vector<8xf32>
      %69 = vector.shape_cast %68 : vector<8xf32> to vector<8x1xf32>
      %70 = tpu.reciprocal %69 {approx = true} : vector<8x1xf32> -> vector<8x1xf32>
      %71 = vector.broadcast %70 : vector<8x1xf32> to vector<8x8xf32>
      %72 = arith.mulf %67, %71 : vector<8x8xf32>
      %73 = arith.truncf %72 : vector<8x8xf32> to vector<8x8xbf16>
      %74 = arith.truncf %55 : vector<8x8xf32> to vector<8x8xbf16>
      %cst_30 = arith.constant dense<0.000000e+00> : vector<8x8xf32>
      %75 = tpu.matmul %73, %74, %cst_30 {dimension_numbers = #tpu.dot_dimension_numbers<[1], [0], [0], [1], [0, 0, 1, 1], [], []>} : vector<8x8xbf16>, vector<8x8xbf16>, vector<8x8xf32> -> vector<8x8xf32>
      %76 = vector.extract_strided_slice %29 {offsets = [0, 16], sizes = [8, 8], strides = [1, 1]} : vector<8x96xf32> to vector<8x8xf32>
      %77 = vector.extract_strided_slice %29 {offsets = [0, 48], sizes = [8, 8], strides = [1, 1]} : vector<8x96xf32> to vector<8x8xf32>
      %78 = vector.extract_strided_slice %29 {offsets = [0, 80], sizes = [8, 8], strides = [1, 1]} : vector<8x96xf32> to vector<8x8xf32>
      %79 = arith.truncf %76 : vector<8x8xf32> to vector<8x8xbf16>
      %80 = arith.truncf %77 : vector<8x8xf32> to vector<8x8xbf16>
      %cst_31 = arith.constant dense<0.000000e+00> : vector<8x8xf32>
      %81 = tpu.matmul %79, %80, %cst_31 {dimension_numbers = #tpu.dot_dimension_numbers<[1], [1], [0], [0], [0, 0, 1, 0], [], []>} : vector<8x8xbf16>, vector<8x8xbf16>, vector<8x8xf32> -> vector<8x8xf32>
      %cst_32 = arith.constant 0.353553385 : f32
      %82 = vector.broadcast %cst_32 : f32 to vector<8x8xf32>
      %83 = arith.mulf %81, %82 : vector<8x8xf32>
      %84 = vector.broadcast %6 : vector<1x8xf32> to vector<8x8xf32>
      %85 = arith.addf %83, %84 : vector<8x8xf32>
      %cst_33 = arith.constant dense<0xFF800000> : vector<8xf32>
      %86 = vector.multi_reduction <maximumf>, %85, %cst_33 [1] : vector<8x8xf32> to vector<8xf32>
      %87 = vector.shape_cast %86 : vector<8xf32> to vector<8x1xf32>
      %88 = vector.broadcast %87 : vector<8x1xf32> to vector<8x8xf32>
      %89 = arith.subf %85, %88 : vector<8x8xf32>
      %90 = math.exp %89 : vector<8x8xf32>
      %cst_34 = arith.constant dense<0.000000e+00> : vector<8xf32>
      %91 = vector.multi_reduction <add>, %90, %cst_34 [1] : vector<8x8xf32> to vector<8xf32>
      %92 = vector.shape_cast %91 : vector<8xf32> to vector<8x1xf32>
      %93 = tpu.reciprocal %92 {approx = true} : vector<8x1xf32> -> vector<8x1xf32>
      %94 = vector.broadcast %93 : vector<8x1xf32> to vector<8x8xf32>
      %95 = arith.mulf %90, %94 : vector<8x8xf32>
      %96 = arith.truncf %95 : vector<8x8xf32> to vector<8x8xbf16>
      %97 = arith.truncf %78 : vector<8x8xf32> to vector<8x8xbf16>
      %cst_35 = arith.constant dense<0.000000e+00> : vector<8x8xf32>
      %98 = tpu.matmul %96, %97, %cst_35 {dimension_numbers = #tpu.dot_dimension_numbers<[1], [0], [0], [1], [0, 0, 1, 1], [], []>} : vector<8x8xbf16>, vector<8x8xbf16>, vector<8x8xf32> -> vector<8x8xf32>
      %99 = vector.extract_strided_slice %29 {offsets = [0, 24], sizes = [8, 8], strides = [1, 1]} : vector<8x96xf32> to vector<8x8xf32>
      %100 = vector.extract_strided_slice %29 {offsets = [0, 56], sizes = [8, 8], strides = [1, 1]} : vector<8x96xf32> to vector<8x8xf32>
      %101 = vector.extract_strided_slice %29 {offsets = [0, 88], sizes = [8, 8], strides = [1, 1]} : vector<8x96xf32> to vector<8x8xf32>
      %102 = arith.truncf %99 : vector<8x8xf32> to vector<8x8xbf16>
      %103 = arith.truncf %100 : vector<8x8xf32> to vector<8x8xbf16>
      %cst_36 = arith.constant dense<0.000000e+00> : vector<8x8xf32>
      %104 = tpu.matmul %102, %103, %cst_36 {dimension_numbers = #tpu.dot_dimension_numbers<[1], [1], [0], [0], [0, 0, 1, 0], [], []>} : vector<8x8xbf16>, vector<8x8xbf16>, vector<8x8xf32> -> vector<8x8xf32>
      %cst_37 = arith.constant 0.353553385 : f32
      %105 = vector.broadcast %cst_37 : f32 to vector<8x8xf32>
      %106 = arith.mulf %104, %105 : vector<8x8xf32>
      %107 = vector.broadcast %6 : vector<1x8xf32> to vector<8x8xf32>
      %108 = arith.addf %106, %107 : vector<8x8xf32>
      %cst_38 = arith.constant dense<0xFF800000> : vector<8xf32>
      %109 = vector.multi_reduction <maximumf>, %108, %cst_38 [1] : vector<8x8xf32> to vector<8xf32>
      %110 = vector.shape_cast %109 : vector<8xf32> to vector<8x1xf32>
      %111 = vector.broadcast %110 : vector<8x1xf32> to vector<8x8xf32>
      %112 = arith.subf %108, %111 : vector<8x8xf32>
      %113 = math.exp %112 : vector<8x8xf32>
      %cst_39 = arith.constant dense<0.000000e+00> : vector<8xf32>
      %114 = vector.multi_reduction <add>, %113, %cst_39 [1] : vector<8x8xf32> to vector<8xf32>
      %115 = vector.shape_cast %114 : vector<8xf32> to vector<8x1xf32>
      %116 = tpu.reciprocal %115 {approx = true} : vector<8x1xf32> -> vector<8x1xf32>
      %117 = vector.broadcast %116 : vector<8x1xf32> to vector<8x8xf32>
      %118 = arith.mulf %113, %117 : vector<8x8xf32>
      %119 = arith.truncf %118 : vector<8x8xf32> to vector<8x8xbf16>
      %120 = arith.truncf %101 : vector<8x8xf32> to vector<8x8xbf16>
      %cst_40 = arith.constant dense<0.000000e+00> : vector<8x8xf32>
      %121 = tpu.matmul %119, %120, %cst_40 {dimension_numbers = #tpu.dot_dimension_numbers<[1], [0], [0], [1], [0, 0, 1, 1], [], []>} : vector<8x8xbf16>, vector<8x8xbf16>, vector<8x8xf32> -> vector<8x8xf32>
      %122 = tpu.concatenate %52, %75, %98, %121 in 1 : vector<8x8xf32>, vector<8x8xf32>, vector<8x8xf32>, vector<8x8xf32> -> vector<8x32xf32>
      %123 = arith.truncf %122 : vector<8x32xf32> to vector<8x32xbf16>
      %124 = arith.index_cast %arg18 : i32 to index
      %c0_41 = arith.constant 0 : index
      %c0_42 = arith.constant 0 : index
      %125 = vector.load %arg7[%124, %c0_41, %c0_42] : memref<2x32x32xbf16, #tpu.memory_space<vmem>>, vector<1x32x32xbf16>
      %126 = vector.shape_cast %125 : vector<1x32x32xbf16> to vector<32x32xbf16>
      %cst_43 = arith.constant dense<0.000000e+00> : vector<8x32xf32>
      %127 = tpu.matmul %123, %126, %cst_43 {dimension_numbers = #tpu.dot_dimension_numbers<[1], [0], [0], [1], [0, 0, 1, 1], [], []>} : vector<8x32xbf16>, vector<32x32xbf16>, vector<8x32xf32> -> vector<8x32xf32>
      %128 = arith.index_cast %arg18 : i32 to index
      %c0_44 = arith.constant 0 : index
      %c0_45 = arith.constant 0 : index
      %129 = vector.load %arg8[%128, %c0_44, %c0_45] : memref<2x1x32xf32, #tpu.memory_space<vmem>>, vector<1x1x32xf32>
      %130 = vector.shape_cast %129 : vector<1x1x32xf32> to vector<1x32xf32>
      %131 = vector.broadcast %130 : vector<1x32xf32> to vector<8x32xf32>
      %132 = arith.addf %127, %131 : vector<8x32xf32>
      %133 = arith.addf %arg19, %132 : vector<8x32xf32>
      %134 = arith.index_cast %arg18 : i32 to index
      %c0_46 = arith.constant 0 : index
      %c0_47 = arith.constant 0 : index
      %135 = vector.load %arg9[%134, %c0_46, %c0_47] : memref<2x1x32xf32, #tpu.memory_space<vmem>>, vector<1x1x32xf32>
      %136 = vector.shape_cast %135 : vector<1x1x32xf32> to vector<1x32xf32>
      %137 = arith.index_cast %arg18 : i32 to index
      %c0_48 = arith.constant 0 : index
      %c0_49 = arith.constant 0 : index
      %138 = vector.load %arg10[%137, %c0_48, %c0_49] : memref<2x1x32xf32, #tpu.memory_space<vmem>>, vector<1x1x32xf32>
      %139 = vector.shape_cast %138 : vector<1x1x32xf32> to vector<1x32xf32>
      %cst_50 = arith.constant dense<0.000000e+00> : vector<8xf32>
      %140 = vector.multi_reduction <add>, %133, %cst_50 [1] : vector<8x32xf32> to vector<8xf32>
      %141 = vector.shape_cast %140 : vector<8xf32> to vector<8x1xf32>
      %cst_51 = arith.constant 3.200000e+01 : f32
      %142 = vector.broadcast %cst_51 : f32 to vector<8x1xf32>
      %143 = arith.divf %141, %142 : vector<8x1xf32>
      %144 = vector.broadcast %143 : vector<8x1xf32> to vector<8x32xf32>
      %145 = arith.subf %133, %144 : vector<8x32xf32>
      %146 = arith.mulf %145, %145 : vector<8x32xf32>
      %cst_52 = arith.constant dense<0.000000e+00> : vector<8xf32>
      %147 = vector.multi_reduction <add>, %146, %cst_52 [1] : vector<8x32xf32> to vector<8xf32>
      %148 = vector.shape_cast %147 : vector<8xf32> to vector<8x1xf32>
      %cst_53 = arith.constant 3.200000e+01 : f32
      %149 = vector.broadcast %cst_53 : f32 to vector<8x1xf32>
      %150 = arith.divf %148, %149 : vector<8x1xf32>
      %151 = vector.broadcast %143 : vector<8x1xf32> to vector<8x32xf32>
      %152 = arith.subf %133, %151 : vector<8x32xf32>
      %cst_54 = arith.constant 9.99999974E-6 : f32
      %153 = vector.broadcast %cst_54 : f32 to vector<8x1xf32>
      %154 = arith.addf %150, %153 : vector<8x1xf32>
      %155 = math.rsqrt %154 : vector<8x1xf32>
      %156 = vector.broadcast %155 : vector<8x1xf32> to vector<8x32xf32>
      %157 = arith.mulf %152, %156 : vector<8x32xf32>
      %158 = vector.broadcast %136 : vector<1x32xf32> to vector<8x32xf32>
      %159 = arith.mulf %157, %158 : vector<8x32xf32>
      %160 = vector.broadcast %139 : vector<1x32xf32> to vector<8x32xf32>
      %161 = arith.addf %159, %160 : vector<8x32xf32>
      %162 = arith.truncf %161 : vector<8x32xf32> to vector<8x32xbf16>
      %163 = arith.index_cast %arg18 : i32 to index
      %c0_55 = arith.constant 0 : index
      %c0_56 = arith.constant 0 : index
      %164 = vector.load %arg11[%163, %c0_55, %c0_56] : memref<2x32x64xbf16, #tpu.memory_space<vmem>>, vector<1x32x64xbf16>
      %165 = vector.shape_cast %164 : vector<1x32x64xbf16> to vector<32x64xbf16>
      %cst_57 = arith.constant dense<0.000000e+00> : vector<8x64xf32>
      %166 = tpu.matmul %162, %165, %cst_57 {dimension_numbers = #tpu.dot_dimension_numbers<[1], [0], [0], [1], [0, 0, 1, 1], [], []>} : vector<8x32xbf16>, vector<32x64xbf16>, vector<8x64xf32> -> vector<8x64xf32>
      %167 = arith.index_cast %arg18 : i32 to index
      %c0_58 = arith.constant 0 : index
      %c0_59 = arith.constant 0 : index
      %168 = vector.load %arg12[%167, %c0_58, %c0_59] : memref<2x1x64xf32, #tpu.memory_space<vmem>>, vector<1x1x64xf32>
      %169 = vector.shape_cast %168 : vector<1x1x64xf32> to vector<1x64xf32>
      %170 = vector.broadcast %169 : vector<1x64xf32> to vector<8x64xf32>
      %171 = arith.addf %166, %170 : vector<8x64xf32>
      %cst_60 = arith.constant 0.000000e+00 : f32
      %172 = vector.broadcast %cst_60 : f32 to vector<8x64xf32>
      %173 = arith.maximumf %171, %172 : vector<8x64xf32>
      %174 = arith.truncf %173 : vector<8x64xf32> to vector<8x64xbf16>
      %175 = arith.index_cast %arg18 : i32 to index
      %c0_61 = arith.constant 0 : index
      %c0_62 = arith.constant 0 : index
      %176 = vector.load %arg13[%175, %c0_61, %c0_62] : memref<2x64x32xbf16, #tpu.memory_space<vmem>>, vector<1x64x32xbf16>
      %177 = vector.shape_cast %176 : vector<1x64x32xbf16> to vector<64x32xbf16>
      %cst_63 = arith.constant dense<0.000000e+00> : vector<8x32xf32>
      %178 = tpu.matmul %174, %177, %cst_63 {dimension_numbers = #tpu.dot_dimension_numbers<[1], [0], [0], [1], [0, 0, 1, 1], [], []>} : vector<8x64xbf16>, vector<64x32xbf16>, vector<8x32xf32> -> vector<8x32xf32>
      %179 = arith.index_cast %arg18 : i32 to index
      %c0_64 = arith.constant 0 : index
      %c0_65 = arith.constant 0 : index
      %180 = vector.load %arg14[%179, %c0_64, %c0_65] : memref<2x1x32xf32, #tpu.memory_space<vmem>>, vector<1x1x32xf32>
      %181 = vector.shape_cast %180 : vector<1x1x32xf32> to vector<1x32xf32>
      %182 = vector.broadcast %181 : vector<1x32xf32> to vector<8x32xf32>
      %183 = arith.addf %178, %182 : vector<8x32xf32>
      %184 = arith.addf %161, %183 : vector<8x32xf32>
      %185 = arith.index_cast %arg18 : i32 to index
      %c0_66 = arith.constant 0 : index
      %c0_67 = arith.constant 0 : index
      %186 = vector.load %arg15[%185, %c0_66, %c0_67] : memref<2x1x32xf32, #tpu.memory_space<vmem>>, vector<1x1x32xf32>
      %187 = vector.shape_cast %186 : vector<1x1x32xf32> to vector<1x32xf32>
      %188 = arith.index_cast %arg18 : i32 to index
      %c0_68 = arith.constant 0 : index
      %c0_69 = arith.constant 0 : index
      %189 = vector.load %arg16[%188, %c0_68, %c0_69] : memref<2x1x32xf32, #tpu.memory_space<vmem>>, vector<1x1x32xf32>
      %190 = vector.shape_cast %189 : vector<1x1x32xf32> to vector<1x32xf32>
      %cst_70 = arith.constant dense<0.000000e+00> : vector<8xf32>
      %191 = vector.multi_reduction <add>, %184, %cst_70 [1] : vector<8x32xf32> to vector<8xf32>
      %192 = vector.shape_cast %191 : vector<8xf32> to vector<8x1xf32>
      %cst_71 = arith.constant 3.200000e+01 : f32
      %193 = vector.broadcast %cst_71 : f32 to vector<8x1xf32>
      %194 = arith.divf %192, %193 : vector<8x1xf32>
      %195 = vector.broadcast %194 : vector<8x1xf32> to vector<8x32xf32>
      %196 = arith.subf %184, %195 : vector<8x32xf32>
      %197 = arith.mulf %196, %196 : vector<8x32xf32>
      %cst_72 = arith.constant dense<0.000000e+00> : vector<8xf32>
      %198 = vector.multi_reduction <add>, %197, %cst_72 [1] : vector<8x32xf32> to vector<8xf32>
      %199 = vector.shape_cast %198 : vector<8xf32> to vector<8x1xf32>
      %cst_73 = arith.constant 3.200000e+01 : f32
      %200 = vector.broadcast %cst_73 : f32 to vector<8x1xf32>
      %201 = arith.divf %199, %200 : vector<8x1xf32>
      %202 = vector.broadcast %194 : vector<8x1xf32> to vector<8x32xf32>
      %203 = arith.subf %184, %202 : vector<8x32xf32>
      %cst_74 = arith.constant 9.99999974E-6 : f32
      %204 = vector.broadcast %cst_74 : f32 to vector<8x1xf32>
      %205 = arith.addf %201, %204 : vector<8x1xf32>
      %206 = math.rsqrt %205 : vector<8x1xf32>
      %207 = vector.broadcast %206 : vector<8x1xf32> to vector<8x32xf32>
      %208 = arith.mulf %203, %207 : vector<8x32xf32>
      %209 = vector.broadcast %187 : vector<1x32xf32> to vector<8x32xf32>
      %210 = arith.mulf %208, %209 : vector<8x32xf32>
      %211 = vector.broadcast %190 : vector<1x32xf32> to vector<8x32xf32>
      %212 = arith.addf %210, %211 : vector<8x32xf32>
      scf.yield %212 : vector<8x32xf32>
    }
    %c2_i32_12 = arith.constant 2 : i32
    %c0_13 = arith.constant 0 : index
    %c0_14 = arith.constant 0 : index
    %c0_15 = arith.constant 0 : index
    %17 = vector.load %arg17[%c0_13, %c0_14, %c0_15] : memref<1x8x32xf32, #tpu.memory_space<vmem>>, vector<1x8x32xf32>
    %18 = vector.shape_cast %17 : vector<1x8x32xf32> to vector<8x32xf32>
    %19 = vector.shape_cast %16 : vector<8x32xf32> to vector<1x8x32xf32>
    tpu.vector_store %arg17[%c0_13, %c0_14, %c0_15], %19 {strides = array<i32>} : memref<1x8x32xf32, #tpu.memory_space<vmem>>, vector<1x8x32xf32>,
    return
  }
  func.func @transform_0(%arg0: i32) -> (i32, i32, i32) {
    %c0_i32 = arith.constant 0 : i32
    %c0_i32_0 = arith.constant 0 : i32
    %c0_i32_1 = arith.constant 0 : i32
    return %arg0, %c0_i32, %c0_i32_0 : i32, i32, i32
  }
  func.func @transform_1(%arg0: i32) -> (i32, i32, i32) {
    %c0_i32 = arith.constant 0 : i32
    %c0_i32_0 = arith.constant 0 : i32
    %c0_i32_1 = arith.constant 0 : i32
    return %arg0, %c0_i32, %c0_i32_0 : i32, i32, i32
  }
  func.func @transform_2(%arg0: i32) -> (i32, i32) {
    %c0_i32 = arith.constant 0 : i32
    %c0_i32_0 = arith.constant 0 : i32
    %c0_i32_1 = arith.constant 0 : i32
    return %c0_i32, %c0_i32_0 : i32, i32
  }
  func.func @transform_3(%arg0: i32) -> (i32, i32) {
    %c0_i32 = arith.constant 0 : i32
    %c0_i32_0 = arith.constant 0 : i32
    %c0_i32_1 = arith.constant 0 : i32
    return %c0_i32, %c0_i32_0 : i32, i32
  }
  func.func @transform_4(%arg0: i32) -> (i32, i32, i32) {
    %c0_i32 = arith.constant 0 : i32
    %c0_i32_0 = arith.constant 0 : i32
    %c0_i32_1 = arith.constant 0 : i32
    %c0_i32_2 = arith.constant 0 : i32
    return %c0_i32, %c0_i32_0, %c0_i32_1 : i32, i32, i32
  }
  func.func @transform_5(%arg0: i32) -> (i32, i32, i32) {
    %c0_i32 = arith.constant 0 : i32
    %c0_i32_0 = arith.constant 0 : i32
    %c0_i32_1 = arith.constant 0 : i32
    %c0_i32_2 = arith.constant 0 : i32
    return %c0_i32, %c0_i32_0, %c0_i32_1 : i32, i32, i32
  }
  func.func @transform_6(%arg0: i32) -> (i32, i32, i32) {
    %c0_i32 = arith.constant 0 : i32
    %c0_i32_0 = arith.constant 0 : i32
    %c0_i32_1 = arith.constant 0 : i32
    %c0_i32_2 = arith.constant 0 : i32
    return %c0_i32, %c0_i32_0, %c0_i32_1 : i32, i32, i32
  }
  func.func @transform_7(%arg0: i32) -> (i32, i32, i32) {
    %c0_i32 = arith.constant 0 : i32
    %c0_i32_0 = arith.constant 0 : i32
    %c0_i32_1 = arith.constant 0 : i32
    %c0_i32_2 = arith.constant 0 : i32
    return %c0_i32, %c0_i32_0, %c0_i32_1 : i32, i32, i32
  }
  func.func @transform_8(%arg0: i32) -> (i32, i32, i32) {
    %c0_i32 = arith.constant 0 : i32
    %c0_i32_0 = arith.constant 0 : i32
    %c0_i32_1 = arith.constant 0 : i32
    %c0_i32_2 = arith.constant 0 : i32
    return %c0_i32, %c0_i32_0, %c0_i32_1 : i32, i32, i32
  }
  func.func @transform_9(%arg0: i32) -> (i32, i32, i32) {
    %c0_i32 = arith.constant 0 : i32
    %c0_i32_0 = arith.constant 0 : i32
    %c0_i32_1 = arith.constant 0 : i32
    %c0_i32_2 = arith.constant 0 : i32
    return %c0_i32, %c0_i32_0, %c0_i32_1 : i32, i32, i32
  }
  func.func @transform_10(%arg0: i32) -> (i32, i32, i32) {
    %c0_i32 = arith.constant 0 : i32
    %c0_i32_0 = arith.constant 0 : i32
    %c0_i32_1 = arith.constant 0 : i32
    %c0_i32_2 = arith.constant 0 : i32
    return %c0_i32, %c0_i32_0, %c0_i32_1 : i32, i32, i32
  }
  func.func @transform_11(%arg0: i32) -> (i32, i32, i32) {
    %c0_i32 = arith.constant 0 : i32
    %c0_i32_0 = arith.constant 0 : i32
    %c0_i32_1 = arith.constant 0 : i32
    %c0_i32_2 = arith.constant 0 : i32
    return %c0_i32, %c0_i32_0, %c0_i32_1 : i32, i32, i32
  }
  func.func @transform_12(%arg0: i32) -> (i32, i32, i32) {
    %c0_i32 = arith.constant 0 : i32
    %c0_i32_0 = arith.constant 0 : i32
    %c0_i32_1 = arith.constant 0 : i32
    %c0_i32_2 = arith.constant 0 : i32
    return %c0_i32, %c0_i32_0, %c0_i32_1 : i32, i32, i32
  }
  func.func @transform_13(%arg0: i32) -> (i32, i32, i32) {
    %c0_i32 = arith.constant 0 : i32
    %c0_i32_0 = arith.constant 0 : i32
    %c0_i32_1 = arith.constant 0 : i32
    %c0_i32_2 = arith.constant 0 : i32
    return %c0_i32, %c0_i32_0, %c0_i32_1 : i32, i32, i32
  }
  func.func @transform_14(%arg0: i32) -> (i32, i32, i32) {
    %c0_i32 = arith.constant 0 : i32
    %c0_i32_0 = arith.constant 0 : i32
    %c0_i32_1 = arith.constant 0 : i32
    %c0_i32_2 = arith.constant 0 : i32
    return %c0_i32, %c0_i32_0, %c0_i32_1 : i32, i32, i32
  }
  func.func @transform_15(%arg0: i32) -> (i32, i32, i32) {
    %c0_i32 = arith.constant 0 : i32
    %c0_i32_0 = arith.constant 0 : i32
    %c0_i32_1 = arith.constant 0 : i32
    %c0_i32_2 = arith.constant 0 : i32
    return %c0_i32, %c0_i32_0, %c0_i32_1 : i32, i32, i32
  }
  func.func @transform_16(%arg0: i32) -> (i32, i32, i32) {
    %c0_i32 = arith.constant 0 : i32
    %c0_i32_0 = arith.constant 0 : i32
    %c0_i32_1 = arith.constant 0 : i32
    return %arg0, %c0_i32, %c0_i32_0 : i32, i32, i32
  }
}

</mosaic_0001>

<bundles_post_ra>
// kernel: tpu_custom_call.1
= control target key start
LH: loop header
LB: loop body
LE: loop exit
PB: predicated region body
PF: predicated region fallthrough
CT: control target
= control target key end

     0   :  { %s2316_s0 = inlined_call_operand.vmem [shape: f32[2,8,48], index: 0, kind: input, shape index: {}]   ;;  %s2317_s1 = inlined_call_operand.vmem [shape: s32[2,1,8], index: 1, kind: input, shape index: {}]   ;;  %s2318_s2 = inlined_call_operand.vmem [shape: bf16[48,32], index: 2, kind: input, shape index: {}]   ;;  %s2319_s3 = inlined_call_operand.vmem [shape: f32[1,32], index: 3, kind: input, shape index: {}]   ;;  %s2320_s4 = inlined_call_operand.vmem [shape: bf16[2,32,96], index: 4, kind: input, shape index: {}]   ;;  %s2321_s5 = inlined_call_operand.vmem [shape: f32[2,1,96], index: 5, kind: input, shape index: {}]   ;;  %s2322_s6 = inlined_call_operand.vmem [shape: bf16[2,32,32], index: 6, kind: input, shape index: {}]   ;;  %s2323_s7 = inlined_call_operand.vmem [shape: f32[2,1,32], index: 7, kind: input, shape index: {}]   ;;  %s2324_s8 = inlined_call_operand.vmem [shape: f32[2,1,32], index: 8, kind: input, shape index: {}]   ;;  %s2325_s9 = inlined_call_operand.vmem [shape: f32[2,1,32], index: 9, kind: input, shape index: {}]   ;;  %s2326_s10 = inlined_call_operand.vmem [shape: bf16[2,32,64], index: 10, kind: input, shape index: {}]   ;;  %s2327_s11 = inlined_call_operand.vmem [shape: f32[2,1,64], index: 11, kind: input, shape index: {}]   ;;  %s2328_s12 = inlined_call_operand.vmem [shape: bf16[2,64,32], index: 12, kind: input, shape index: {}]   ;;  %s2329_s13 = inlined_call_operand.vmem [shape: f32[2,1,32], index: 13, kind: input, shape index: {}]   ;;  %s2330_s14 = inlined_call_operand.vmem [shape: f32[2,1,32], index: 14, kind: input, shape index: {}]   ;;  %s2331_s15 = inlined_call_operand.vmem [shape: f32[2,1,32], index: 15, kind: input, shape index: {}]   ;;  %s2332_s16 = inlined_call_operand.hbm [shape: f32[2,8,32], index: 16, kind: output, shape index: {}]  }
   0x1   :  { %2340 = sst [smem:[#allocation11_spill]] %s2316_s0 }
   0x2   :  { %2341 = sst [smem:[#allocation12_spill]] %s2317_s1 }
   0x3   :  { %2342 = sst [smem:[#allocation13_spill]] %s2318_s2 }
   0x4   :  { %21 = vsyncpa [#allocation3], 0 }
   0x5   :  { %23 = vsyncpa [#allocation3 + $0x1], 0  ;;  %s2039_s21 = smov 0   ;;  %s2041_s22 = smov 0  }
   0x6   :  { %s2043_s23 = smov 0   ;;  %s2045_s24 = smov 0  }
   0x7 LB: > { %2343 = sst [smem:[#allocation5_spill]] %s1912_s21  ;;  %s2060_s25 = sadd.s32 4294967295, %s1924_s24   ;;  %s1924_s24 = sphi %s2045_s24, %s2361_s24   ;;  %s1920_s23 = sphi %s2043_s23, %s2363_s23   ;;  %s1916_s22 = sphi %s2041_s22, %s2365_s22   ;;  %s1912_s21 = sphi %s2039_s21, %s2364_s21  }
   0x8   : > { %2344 = sst [smem:[#allocation6_spill]] %s1920_s23  ;;  %s1566_s26 = sadd.s32 4294967294, %s1924_s24  }
   0x9   : > { %2345 = sst [smem:[#allocation7_spill]] %s1924_s24  ;;  %s2064_s27 = sadd.s32 1, %s1924_s24  }
   0xa   : > { %2346 = sst [smem:[#allocation8_spill]] %s2064_s27  ;;  %s382_s28 = sadd.s32 1, %s1920_s23 }
   0xb   : > { %s379_s29 = ssub.s32 %s1924_s24, %s2064_s27  ;;  %p392_p0 = scmp.ne.s32.totalorder %s1920_s23, %s1916_s22 }
   0xc   : > { %p380_p1 = scmp.eq.s32.totalorder %s379_s29, 0  ;;  %p393_p2 = scmp.eq.s32.totalorder %s2060_s25, 1 }
   0xd   : > { %p398_p3 = scmp.ne.s32.totalorder %s1916_s22, %s1912_s21  ;;  %p399_p4 = scmp.eq.s32.totalorder %s1566_s26, 1 }
   0xe   : > { %s2075_s30 = scalar_select %p380_p1, %s1920_s23, %s382_s28  }
   0xf   : > { %p2077_p5 = por %p393_p2, %p392_p0  ;;  %p2081_p6 = por %p399_p4, %p398_p3 }
  0x10   : > { %2347 = sst [smem:[#allocation9_spill]] %s2075_s30  ;;  %p1569_p7 = scmp.ge.s32.totalorder %s1924_s24, 1 }
  0x11   : > { %s2349_s17 = scalar_select %p2081_p6, 1, 0 }
  0x12   : > { %p472_p8 = scmp.lt.s32.totalorder %s1924_s24, 3 }
  0x13   : > { %2350 = sst [smem:[#allocation10_spill]] %s2349_s17 }
  0x14   : > { %p473_p9 = pnand %p1569_p7, %p472_p8 }
  0x15   : > { %s2334_s18 = sand.u32 (!%p473_p9), 1, %s1916_s22   ;;  %s2351_s2 = sld [smem:[#allocation13_spill]] (!%p473_p9) }
  0x16   : > { %476 = sbr.rel (%p473_p9) target bundleno = 2676 (0xa74), region = 84  ;;  %s2090_s19 = sshll.u32 (!%p473_p9), %s2334_s18, 3 }
  0x17   : > { %p524_p10 = scmp.lt.s32.totalorder (!%p473_p9), %s2060_s25, 1  ;;  %s2352_s1 = sld [smem:[#allocation12_spill]] (!%p473_p9) }
  0x18   : > { %s2353_s28 = sld [smem:[#allocation11_spill]] (!%p473_p9)  ;;  %s2117_s24 = smov (!%p473_p9), 0  }
  0x1b   : > { %v1934_v0 = vmov 0.0   ;;  %v1823_v1 = vld [vmem:[%s2351_s2 + $0x10] sm:$0xff]   ;;  %v1824_v2 = vld [vmem:[%s2351_s2 + $0x8] sm:$0xff]   ;;  %vm1935_vm0 = vmmov 0   ;;  %s525_s30 = scalar_select %p524_p10, %s2060_s25, 1  ;;  %v1825_v3 = vld [vmem:[%s2351_s2] sm:$0xff]  }
  0x1c   : > { %1655 = vmatprep.subr.bf16.mxu0 %v1934_v0  ;;  %1661 = vmatprep.mubr.msk.bf16.mxu0 %vm1935_vm0, %v1934_v0  ;;  %v1936_v6 = vmov -1e+30   ;;  %vm568_vm2 = vcmask 392192   ;;  %v1572_v9 = vld [vmem:[%s2319_s3] ss:$0 sm:$0xff] }
  0x1d   : > { %1656 = vmatpush3.bf16.msra.mxu0 %v1823_v1  ;;  %s1571_s27 = sshll.u32 %s525_s30, 3  ;;  %s530_s20 = scalar_lea.vmem %s2352_s1, %s525_s30 }
  0x1e   : > { %1657 = vmatprep.subr.bf16.mxu0 %v1934_v0  ;;  %s527_s29 = scalar_lea.vmem %s2353_s28, %s1571_s27  ;;  %v532_v4 = vld [vmem:[%s530_s20] sm:$0x1] }
  0x1f   : > { %vm533_vm1 = vcmp.ne.s32.totalorder %v532_v4, 0  ;;  %v535_v5 = vld [vmem:[%s527_s29] sm:$0xff] }
  0x20   : > { %v2109_v7 = vsel %vm533_vm1, 0.0, %v1936_v6  ;;  %v536_v8 = vpack.c.bf16 %v535_v5, %v535_v5 }
  0x21   : > { %1658 = vmatpush3.bf16.msra.mxu0 %v1824_v2 }
  0x22   : > { %1659 = vmatprep.subr.bf16.mxu0 %v1934_v0 }
  0x25   : > { %1660 = vmatpush3.bf16.msra.mxu0 %v1825_v3 }
  0x28   : > { %1662 = vmatmul.mubr.msk.bf16.vlgmr.msra.gmra.mxu0 %vm568_vm2, %v536_v8 }
  0xe8   : > { %v606_v10 = vpop.f32.mrf.mxu0 }
  0xe9   : > { %v607_v11 = vadd.f32 %v1572_v9, %v606_v10  }
  0xea   : > { %v1663_v12 = vpop.f32.mrf.mxu0 }
  0xec   : > { %v609_v13 = vpop.f32.mrf.mxu0 }
  0xee   : > { %v1664_v14 = vpop.f32.mrf.mxu0 }
  0xef LB: >> { %v1937_v15 = vmov 0.0   ;;  %vm1938_vm3 = vmmov 0   ;;  %s1617_s27 = sshll.u32 %s1932_s24, 4  ;;  %v619_v18 = vpack.c.bf16 %v1928_v11, %v1928_v11  ;;  %vm647_vm4 = vcmask 261120   ;;  %s1940_s26 = smov 96   ;;  %s1932_s24 = sphi %s2117_s24, %s617_s24   ;;  %v1928_v11 = vphi %v607_v11, %v2354_v11  }
  0xf0   : >> { %1665 = vmatprep.subr.bf16.mxu0 %v1937_v15  ;;  %1669 = vmatprep.mubr.msk.bf16.mxu0 %vm1938_vm3, %v1937_v15  ;;  %s622_s20 = scalar_lea.vmem %s2320_s4, %s1617_s27  ;;  %s2138_s29 = scalar_lea.vmem %s2322_s6, %s1617_s27  ;;  %vm695_vm5 = vcmask 64512   ;;  %v744_v37 = vlaneseq  ;;  %vm767_vm6 = vcmask 1043456   ;;  %vm1160_vm7 = vcmask 130048  }
  0xf1   : >> { %1673 = vmatprep.subr.bf16.mxu1 %v1937_v15  ;;  %1675 = vmatprep.mubr.msk.bf16.mxu1 %vm1938_vm3, %v1937_v15  ;;  %v1826_v16 = vld [vmem:[%s622_s20 + $0x8] sm:$0xff]   ;;  %v1827_v17 = vld [vmem:[%s622_s20] sm:$0xff]   ;;  %s2143_s21 = scalar_lea.vmem %s2326_s10, %s1617_s27  ;;  %s627_s20 = scalar_lea.vmem %s2321_s5, %s1932_s24  ;;  %vm1162_vm8 = vcmask 195584   ;;  %vm1382_vm9 = vcmask 523264  }
  0xf2   : >> { %1666 = vmatpush3.bf16.msra.mxu0 %v1826_v16  ;;  %v1579_v19 = vld [vmem:[%s627_s20] ss:$0 sm:$0xff]  ;;  %s1939_s27 = smov 120   ;;  %s1941_s28 = smov 80   ;;  %v745_v38 = vshrl.u32 %v744_v37, 7 }
  0xf3   : >> { %1667 = vmatprep.subr.bf16.mxu0 %v1937_v15  ;;  %s1942_s23 = smov 88   ;;  %s1943_s18 = smov 72  }
  0xf4   : >> { %s1944_s30 = smov 112   ;;  %s1945_s17 = smov 104   ;;  %v746_v39 = vsub.s32 0, %v745_v38 }
  0xf5   : >> { %s1946_s20 = smov 56  }
  0xf6   : >> { %1668 = vmatpush3.bf16.msra.mxu0 %v1827_v17  ;;  %v747_v40 = vrot.slane %v2109_v7, %v746_v39 }
  0xf7   : >> { %1679 = vmatprep.subr.bf16.mxu0 %v1937_v15 }
  0xf9   : >> { %1670 = vmatmul.mubr.msk.bf16.vlgmr.msra.gmra.mxu0 %vm647_vm4, %v619_v18 }
  0xfa   : >> { %1681 = vmatprep.mubr.msk.bf16.mxu0 %vm1938_vm3, %v1937_v15 }
 0x1b9   : >> { %v685_v20 = vpop.f32.mrf.mxu0 }
 0x1ba   : >> { %v686_v21 = vadd.f32 %v1579_v19, %v685_v20 }
 0x1bb   : >> { %v1671_v22 = vpop.f32.mrf.mxu0 }
 0x1bc   : >> { %v2156_v23 = vpack.c.bf16 %v686_v21, %v686_v21 }
 0x1bd   : >> { %v688_v24 = vpop.f32.mrf.mxu0 }
 0x1be   : >> { %811 = vrot.lane.b32.xlu1 %v2156_v23, %s1939_s27  ;;  %693 = vrot.lane.b32.xlu0 %v2156_v23, %s1940_s26  ;;  %s1947_s27 = smov 64   ;;  %s1948_s26 = smov 40  }
 0x1bf   : >> { %v1672_v25 = vpop.f32.mrf.mxu0 }
 0x1c2   : >> { %925 = vrot.lane.b32.xlu1 %v2156_v23, %s1941_s28  ;;  %813 = vrot.lane.b32.xlu0 %v2156_v23, %s1942_s23  ;;  %s1949_s28 = smov 48   ;;  %s1950_s23 = smov 8  }
 0x1c6   : >> { %1037 = vrot.lane.b32.xlu1 %v2156_v23, %s1943_s18  ;;  %923 = vrot.lane.b32.xlu0 %v2156_v23, %s1944_s30  ;;  %s1951_s18 = smov 16   ;;  %s1952_s30 = smov 24  }
 0x1ca   : >> { %1035 = vrot.lane.b32.xlu0 %v2156_v23, %s1945_s17  ;;  %s1427_s17 = scalar_lea.vmem %s2330_s14, %s1932_s24 }
 0x230   : >> { %v694_v26 = vpop.permute.xlu0 %693  ;;  %v812_v29 = vpop.permute.xlu1 %811 }
 0x231   : >> { %v700_v27 = vsel %vm695_vm5, %v694_v26, 0 }
 0x232   : >> { %1674 = vmatpush3.bf16.xpose.msra.mxu1 %v700_v27 }
 0x233   : >> { %1685 = vmatprep.subr.bf16.mxu1 %v1937_v15 }
 0x234   : >> { %v814_v28 = vpop.permute.xlu0 %813  ;;  %v926_v31 = vpop.permute.xlu1 %925 }
 0x235   : >> { %v819_v30 = vsel %vm695_vm5, %v814_v28, 0  ;;  %v931_v32 = vsel %vm695_vm5, %v926_v31, 0 }
 0x238   : >> { %v1038_v33 = vpop.permute.xlu1 %1037  ;;  %v924_v34 = vpop.permute.xlu0 %923 }
 0x239   : >> { %1676 = vmatmul.mubr.msk.bf16.vlgmr.msra.gmra.mxu1 %vm695_vm5, %v2156_v23  ;;  %v1043_v35 = vsel %vm695_vm5, %v1038_v33, 0 }
 0x23a   : >> { %1686 = vmatpush3.bf16.xpose.msra.mxu1 %v819_v30  ;;  %1687 = vmatprep.mubr.msk.bf16.mxu1 %vm1938_vm3, %v1937_v15 }
 0x23b   : >> { %1697 = vmatprep.subr.bf16.mxu1 %v1937_v15 }
 0x23c   : >> { %v1036_v36 = vpop.permute.xlu0 %1035 }
 0x241   : >> { %1688 = vmatmul.mubr.msk.bf16.vlgmr.msra.gmra.mxu1 %vm695_vm5, %v812_v29 }
 0x242   : >> { %1698 = vmatpush3.bf16.xpose.msra.mxu1 %v931_v32  ;;  %1699 = vmatprep.mubr.msk.bf16.mxu1 %vm1938_vm3, %v1937_v15 }
 0x243   : >> { %1709 = vmatprep.subr.bf16.mxu1 %v1937_v15 }
 0x249   : >> { %1700 = vmatmul.mubr.msk.bf16.vlgmr.msra.gmra.mxu1 %vm695_vm5, %v924_v34 }
 0x24a   : >> { %1710 = vmatpush3.bf16.xpose.msra.mxu1 %v1043_v35  ;;  %1711 = vmatprep.mubr.msk.bf16.mxu1 %vm1938_vm3, %v1937_v15 }
 0x24b   : >> { %1721 = vmatprep.subr.bf16.mxu1 %v1937_v15 }
 0x251   : >> { %1712 = vmatmul.mubr.msk.bf16.vlgmr.msra.gmra.mxu1 %vm695_vm5, %v1036_v36 }
 0x252   : >> { %1725 = vmatprep.mubr.msk.bf16.mxu1 %vm1938_vm3, %v1937_v15 }
 0x2f9   : >> { %v736_v41 = vpop.f32.mrf.mxu1 }
 0x2fa   : >> { %v742_v42 = vmul.f32 0.35355338, %v736_v41 }
 0x2fb   : >> { %v1677_v43 = vpop.f32.mrf.mxu1 }
 0x2fc   : >> { %v749_v44 = vadd.f32 %v747_v40, %v742_v42 }
 0x2fd   : >> { %v739_v45 = vpop.f32.mrf.mxu1 }
 0x2fe   : >> { %v750_v46 = vsel %vm695_vm5, %v749_v44, -inf }
 0x2ff   : >> { %751 = vmax.xlane.f32.xlu1 %v750_v46  ;;  %v1678_v47 = vpop.f32.mrf.mxu1 }
 0x301   : >> { %v855_v48 = vpop.f32.mrf.mxu1 }
 0x302   : >> { %v861_v49 = vmul.f32 0.35355338, %v855_v48 }
 0x303   : >> { %v1689_v50 = vpop.f32.mrf.mxu1 }
 0x304   : >> { %v862_v51 = vadd.f32 %v861_v49, %v747_v40 }
 0x305   : >> { %v858_v52 = vpop.f32.mrf.mxu1 }
 0x306   : >> { %v863_v53 = vsel %vm695_vm5, %v862_v51, -inf }
 0x307   : >> { %864 = vmax.xlane.f32.xlu0 %v863_v53  ;;  %v1690_v54 = vpop.f32.mrf.mxu1 }
 0x309   : >> { %v967_v55 = vpop.f32.mrf.mxu1 }
 0x30a   : >> { %v973_v56 = vmul.f32 0.35355338, %v967_v55 }
 0x30b   : >> { %v1701_v57 = vpop.f32.mrf.mxu1 }
 0x30c   : >> { %v974_v58 = vadd.f32 %v973_v56, %v747_v40 }
 0x30d   : >> { %v970_v59 = vpop.f32.mrf.mxu1 }
 0x30e   : >> { %v975_v60 = vsel %vm695_vm5, %v974_v58, -inf }
 0x30f   : >> { %976 = vmax.xlane.f32.xlu0 %v975_v60  ;;  %v1702_v61 = vpop.f32.mrf.mxu1  ;;  %v1828_v60 = vld [vmem:[%s2138_s29 + $0x8] sm:$0xff]  }
 0x310   : >> { %1722 = vmatpush3.bf16.msra.mxu1 %v1828_v60  ;;  %v1829_v61 = vld [vmem:[%s2138_s29] sm:$0xff]  }
 0x311   : >> { %v1079_v62 = vpop.f32.mrf.mxu1  ;;  %1723 = vmatprep.subr.bf16.mxu1 %v1937_v15 }
 0x312   : >> { %v1085_v63 = vmul.f32 0.35355338, %v1079_v62 }
 0x313   : >> { %v1713_v0 = vpop.f32.mrf.mxu1 }
 0x314   : >> { %v1086_v1 = vadd.f32 %v1085_v63, %v747_v40  ;;  %1724 = vmatpush3.bf16.msra.mxu1 %v1829_v61 }
 0x315   : >> { %v1082_v2 = vpop.f32.mrf.mxu1  ;;  %1737 = vmatprep.subr.bf16.mxu1 %v1937_v15 }
 0x316   : >> { %v1087_v3 = vsel %vm695_vm5, %v1086_v1, -inf }
 0x317   : >> { %1088 = vmax.xlane.f32.xlu1 %v1087_v3  ;;  %v1714_v4 = vpop.f32.mrf.mxu1 }
 0x388   : >> { %v752_v5 = vpop.xlane.xlu1 %751 }
 0x389   : >> { %v753_v6 = vsub.f32 %v749_v44, %v752_v5 }
 0x38b   : >> { %v754_v8 = vmul.f32 1.442695, %v753_v6 }
 0x38d   : >> { %1836 = vpow2.f32 %v754_v8 }
 0x390   : >> { %v865_v9 = vpop.xlane.xlu0 %864 }
 0x391   : >> { %v866_v10 = vsub.f32 %v862_v51, %v865_v9 }
 0x393   : >> { %v867_v12 = vmul.f32 1.442695, %v866_v10 }
 0x395   : >> { %1838 = vpow2.f32 %v867_v12 }
 0x398   : >> { %v977_v13 = vpop.xlane.xlu0 %976 }
 0x399   : >> { %v978_v14 = vsub.f32 %v974_v58, %v977_v13 }
 0x39a   : >> { %v1837_v16 = vpop.eup %1836 }
 0x39b   : >> { %v979_v17 = vmul.f32 1.442695, %v978_v14  ;;  %v756_v18 = vsel %vm695_vm5, %v1837_v16, 0.0 }
 0x39c   : >> { %757 = vadd.xlane.f32.xlu0 %v756_v18 }
 0x39d   : >> { %1840 = vpow2.f32 %v979_v17 }
 0x3a0   : >> { %v1089_v24 = vpop.xlane.xlu1 %1088 }
 0x3a1   : >> { %v1090_v25 = vsub.f32 %v1086_v1, %v1089_v24 }
 0x3a2   : >> { %v1839_v19 = vpop.eup %1838 }
 0x3a3   : >> { %v869_v20 = vsel %vm695_vm5, %v1839_v19, 0.0  ;;  %v1091_v26 = vmul.f32 1.442695, %v1090_v25 }
 0x3a4   : >> { %870 = vadd.xlane.f32.xlu1 %v869_v20 }
 0x3a5   : >> { %1842 = vpow2.f32 %v1091_v26 }
 0x3aa   : >> { %v1841_v21 = vpop.eup %1840 }
 0x3ab   : >> { %v981_v22 = vsel %vm695_vm5, %v1841_v21, 0.0 }
 0x3ac   : >> { %982 = vadd.xlane.f32.xlu0 %v981_v22 }
 0x3b2   : >> { %v1843_v27 = vpop.eup %1842 }
 0x3b3   : >> { %v1093_v28 = vsel %vm695_vm5, %v1843_v27, 0.0 }
 0x3b5   : >> { %875 = vrot.lane.b32.xlu1 %v2156_v23, %s1946_s20  ;;  %s1171_s20 = scalar_lea.vmem %s2323_s7, %s1932_s24 }
 0x3c2   : >> { %762 = vrot.lane.b32.xlu0 %v2156_v23, %s1947_s27  ;;  %s1620_s27 = sshll.u32 %s1932_s24, 5 }
 0x3c6   : >> { %1099 = vrot.lane.b32.xlu0 %v2156_v23, %s1948_s26  ;;  %s1429_s26 = scalar_lea.vmem %s2331_s15, %s1932_s24 }
 0x3d9   : >> { %1094 = vadd.xlane.f32.xlu1 %v1093_v28 }
 0x3ea   : >> { %987 = vrot.lane.b32.xlu1 %v2156_v23, %s1949_s28  ;;  %s1274_s28 = scalar_lea.vmem %s2327_s11, %s1932_s24 }
 0x425   : >> { %v758_v29 = vpop.xlane.xlu0 %757 }
 0x426   : >> { %1844 = vrcp.f32 %v758_v29 }
 0x42d   : >> { %v871_v30 = vpop.xlane.xlu1 %870 }
 0x42e   : >> { %1846 = vrcp.f32 %v871_v30  ;;  %v1830_v30 = vld [vmem:[%s2143_s21 + $0x8] sm:$0xff]  }
 0x431   : >> { %v876_v36 = vpop.permute.xlu1 %875 }
 0x432   : >> { %v881_v39 = vsel %vm767_vm6, %v876_v36, 0 }
 0x433   : >> { %v1845_v31 = vpop.eup %1844 }
 0x434   : >> { %v760_v33 = vmul.f32 %v1845_v31, %v1837_v16  ;;  %v1592_v16 = vld [vmem:[%s1171_s20] ss:$0 sm:$0xff]  ;;  %s1237_s20 = scalar_lea.vmem %s2325_s9, %s1932_s24 }
 0x435   : >> { %v983_v32 = vpop.xlane.xlu0 %982  ;;  %v1831_v31 = vld [vmem:[%s2143_s21] sm:$0xff]  }
 0x436   : >> { %v761_v37 = vpack.c.bf16 %v760_v33, %v760_v33  ;;  %1848 = vrcp.f32 %v983_v32 }
 0x439   : >> { %v763_v34 = vpop.permute.xlu0 %762 }
 0x43a   : >> { %v769_v35 = vsel %vm767_vm6, %v763_v34, 0 }
 0x43b   : >> { %1680 = vmatpush3.bf16.msra.mxu0 %v769_v35  ;;  %v1847_v38 = vpop.eup %1846 }
 0x43c   : >> { %1691 = vmatprep.subr.bf16.mxu0 %v1937_v15  ;;  %v873_v23 = vmul.f32 %v1847_v38, %v1839_v19 }
 0x43d   : >> { %v1100_v46 = vpop.permute.xlu0 %1099 }
 0x43e   : >> { %1682 = vmatmul.mubr.msk.bf16.vlgmr.msra.gmra.mxu0 %vm695_vm5, %v761_v37  ;;  %v874_v40 = vpack.c.bf16 %v873_v23, %v873_v23  ;;  %v1105_v48 = vsel %vm767_vm6, %v1100_v46, 0 }
 0x43f   : >> { %1692 = vmatpush3.bf16.msra.mxu0 %v881_v39  ;;  %1693 = vmatprep.mubr.msk.bf16.mxu0 %vm1938_vm3, %v1937_v15  ;;  %v1597_v39 = vld [vmem:[%s1237_s20] ss:$0 sm:$0xff] }
 0x440   : >> { %1703 = vmatprep.subr.bf16.mxu0 %v1937_v15 }
 0x443   : >> { %v1849_v41 = vpop.eup %1848 }
 0x444   : >> { %v985_v43 = vmul.f32 %v1849_v41, %v1841_v21 }
 0x446   : >> { %1694 = vmatmul.mubr.msk.bf16.vlgmr.msra.gmra.mxu0 %vm695_vm5, %v874_v40  ;;  %v986_v47 = vpack.c.bf16 %v985_v43, %v985_v43 }
 0x447   : >> { %1705 = vmatprep.mubr.msk.bf16.mxu0 %vm1938_vm3, %v1937_v15 }
 0x462   : >> { %v1095_v42 = vpop.xlane.xlu1 %1094 }
 0x463   : >> { %1850 = vrcp.f32 %v1095_v42 }
 0x466   : >> { %v988_v44 = vpop.permute.xlu1 %987 }
 0x467   : >> { %v993_v45 = vsel %vm767_vm6, %v988_v44, 0  ;;  %v1599_v44 = vld [vmem:[%s1274_s28] ss:$0 sm:$0xff] }
 0x468   : >> { %1704 = vmatpush3.bf16.msra.mxu0 %v993_v45 }
 0x469   : >> { %1715 = vmatprep.subr.bf16.mxu0 %v1937_v15 }
 0x46b   : >> { %1706 = vmatmul.mubr.msk.bf16.vlgmr.msra.gmra.mxu0 %vm695_vm5, %v986_v47 }
 0x46c   : >> { %1716 = vmatpush3.bf16.msra.mxu0 %v1105_v48  ;;  %1717 = vmatprep.mubr.msk.bf16.mxu0 %vm1938_vm3, %v1937_v15 }
 0x46d   : >> { %1729 = vmatprep.subr.bf16.mxu0 %v1937_v15 }
 0x470   : >> { %v1851_v49 = vpop.eup %1850 }
 0x471   : >> { %v1097_v50 = vmul.f32 %v1851_v49, %v1843_v27 }
 0x473   : >> { %v1098_v51 = vpack.c.bf16 %v1097_v50, %v1097_v50 }
 0x475   : >> { %1718 = vmatmul.mubr.msk.bf16.vlgmr.msra.gmra.mxu0 %vm695_vm5, %v1098_v51 }
 0x476   : >> { %1733 = vmatprep.mubr.msk.bf16.mxu0 %vm1938_vm3, %v1937_v15  ;;  %1730 = vmatpush3.bf16.msra.mxu0 %v1830_v30 }
 0x477   : >> { %1731 = vmatprep.subr.bf16.mxu0 %v1937_v15 }
 0x47a   : >> { %1732 = vmatpush3.bf16.msra.mxu0 %v1831_v31 }
 0x4fe   : >> { %v805_v52 = vpop.f32.mrf.mxu0 }
 0x500   : >> { %v1683_v53 = vpop.f32.mrf.mxu0 }
 0x502   : >> { %v808_v54 = vpop.f32.mrf.mxu0 }
 0x504   : >> { %v1684_v55 = vpop.f32.mrf.mxu0 }
 0x506   : >> { %v917_v56 = vpop.f32.mrf.mxu0 }
 0x507   : >> { %1148 = vrot.lane.b32.xlu1 %v917_v56, %s1950_s23  ;;  %s1341_s23 = scalar_lea.vmem %s2328_s12, %s1620_s27 }
 0x508   : >> { %v1695_v57 = vpop.f32.mrf.mxu0  ;;  %v1833_v32 = vld [vmem:[%s1341_s23 + $0x10] sm:$0xff]   ;;  %v1834_v42 = vld [vmem:[%s1341_s23 + $0x8] sm:$0xff]   ;;  %v1835_v43 = vld [vmem:[%s1341_s23] sm:$0xff]  }
 0x50a   : >> { %v920_v58 = vpop.f32.mrf.mxu0 }
 0x50c   : >> { %v1696_v59 = vpop.f32.mrf.mxu0 }
 0x52b   : >> { %v1029_v62 = vpop.f32.mrf.mxu0 }
 0x52c   : >> { %1152 = vrot.lane.b32.xlu0 %v1029_v62, %s1951_s18 }
 0x52d   : >> { %v1707_v63 = vpop.f32.mrf.mxu0 }
 0x52f   : >> { %v1032_v0 = vpop.f32.mrf.mxu0 }
 0x531   : >> { %v1708_v1 = vpop.f32.mrf.mxu0 }
 0x535   : >> { %v1141_v2 = vpop.f32.mrf.mxu0 }
 0x536   : >> { %1156 = vrot.lane.b32.xlu1 %v1141_v2, %s1952_s30  ;;  %s1235_s30 = scalar_lea.vmem %s2324_s8, %s1932_s24 }
 0x537   : >> { %v1719_v3 = vpop.f32.mrf.mxu0  ;;  %v1596_v37 = vld [vmem:[%s1235_s30] ss:$0 sm:$0xff]  ;;  %s1350_s30 = scalar_lea.vmem %s2329_s13, %s1932_s24  ;;  %s617_s24 = sadd.s32 1, %s1932_s24  }
 0x538   : >> { %p614_p11 = scmp.ge.s32.totalorder %s617_s24, 2  }
 0x539   : >> { %v1144_v4 = vpop.f32.mrf.mxu0  ;;  %s2355_s28 = scalar_lea.vmem (%p614_p11), [#allocation2], %s2090_s19  ;;  %s1614_s21 = sshll.u32 (%p614_p11), %s2060_s25, 7 }
 0x53a   : >> { %v1611_v4 = vld [vmem:[%s1427_s17] ss:$0 sm:$0xff]  ;;  %s2356_s29 = smov (%p614_p11), %s2355_s28  ;;  %s2357_s20 = sand.u32 (%p614_p11), 1, %s1916_s22  }
 0x53b   : >> { %v1720_v5 = vpop.f32.mrf.mxu0  ;;  %s1474_s17 = sshll.u32 (%p614_p11), %s2356_s29, 4  ;;  %s1461_s27 = scalar_lea.sflag (%p614_p11), [#allocation3], %s2357_s20  ;;  %s1475_s17 = int_to_ptr.vmem [resolvable:$true] %s1474_s17 }
 0x53c   : > { %s1856_s24 = scalar_lea.vmem (%p614_p11), %s1475_s17, 128 }
 0x53d   : > { %p1857_p12 = scmp.ne.s32.totalorder (%p614_p11), %s1475_s17, %s1856_s24 }
 0x53f   : > { %p1858_p13 = pnand (%p614_p11), %p1857_p12, %p2077_p5 }
 0x541   : > { %p1859_p0 = pneg (%p614_p11), %p1858_p13 }
 0x579   : >> { %v1149_v6 = vpop.permute.xlu1 %1148 }
 0x57a   : >> { %v1159_v9 = vsel %vm695_vm5, %v805_v52, %v1149_v6  ;;  %v1612_v6 = vld [vmem:[%s1429_s26] ss:$0 sm:$0xff]  ;;  %s1953_s26 = smov (%p614_p11), [#allocation2]  }
 0x57b   : > { %s1860_s1 = sshll.u32 (%p614_p11), %s1953_s26, 4  ;;  %s1861_s1 = int_to_ptr.vmem [resolvable:$false] %s1860_s1 }
 0x57c   : > { %s1862_s2 = scalar_lea.vmem (%p614_p11), %s1861_s1, 256  ;;  %p1863_p1 = scmp.lt.s32.totalorder (%p614_p11), %s1475_s17, %s1861_s1 }
 0x57d   : > { %p1864_p2 = scmp.lt.s32.totalorder (%p614_p11), %s1862_s2, %s1856_s24 }
 0x57f   : > { %p1865_p3 = por (%p614_p11), %p1864_p2, %p1863_p1 }
 0x581   : > { %p1866_p4 = pnand (%p614_p11), %p1865_p3, %p1859_p0 }
 0x59e   : >> { %v1153_v8 = vpop.permute.xlu0 %1152 }
 0x59f   : >> { %v1161_v10 = vsel %vm1160_vm7, %v1159_v9, %v1153_v8 }
 0x5a8   : >> { %v1157_v12 = vpop.permute.xlu1 %1156 }
 0x5a9   : >> { %v1163_v13 = vsel %vm1162_vm8, %v1161_v10, %v1157_v12 }
 0x5aa   : >> { %v1164_v14 = vpack.c.bf16 %v1163_v13, %v1163_v13 }
 0x5ac   : >> { %1726 = vmatmul.mubr.msk.bf16.vlgmr.msra.gmra.mxu1 %vm647_vm4, %v1164_v14 }
 0x5ad   : >> { %1745 = vmatprep.mubr.msk.bf16.mxu1 %vm1938_vm3, %v1937_v15 }
 0x66c   : >> { %v1228_v17 = vpop.f32.mrf.mxu1 }
 0x66d   : >> { %v1229_v18 = vadd.f32 %v1592_v16, %v1228_v17 }
 0x66e   : >> { %v1727_v19 = vpop.f32.mrf.mxu1 }
 0x66f   : >> { %v1234_v20 = vadd.f32 %v1928_v11, %v1229_v18  ;;  %v1832_v11 = vld [vmem:[%s1341_s23 + $0x18] sm:$0xff]   ;;  %s1472_s23 = scalar_lea.hbm (%p614_p11), %s2332_s16, %s1614_s21 }
 0x670   : >> { %v1231_v21 = vpop.f32.mrf.mxu1  ;;  %1738 = vmatpush3.bf16.msra.mxu1 %v1832_v11 }
 0x671   : >> { %v1239_v22 = vsel %vm647_vm4, %v1234_v20, 0.0  ;;  %1739 = vmatprep.subr.bf16.mxu1 %v1937_v15 }
 0x672   : >> { %1240 = vadd.xlane.f32.xlu0 %v1239_v22  ;;  %v1728_v24 = vpop.f32.mrf.mxu1 }
 0x674   : >> { %1740 = vmatpush3.bf16.msra.mxu1 %v1833_v32 }
 0x675   : >> { %1741 = vmatprep.subr.bf16.mxu1 %v1937_v15 }
 0x678   : >> { %1742 = vmatpush3.bf16.msra.mxu1 %v1834_v42 }
 0x679   : >> { %1743 = vmatprep.subr.bf16.mxu1 %v1937_v15  ;;  %v1605_v15 = vld [vmem:[%s1350_s30] ss:$0 sm:$0xff] }
 0x67c   : >> { %1744 = vmatpush3.bf16.msra.mxu1 %v1835_v43 }
 0x6fb   : >> { %v1241_v25 = vpop.xlane.xlu0 %1240 }
 0x6fc   : >> { %v1243_v26 = vmul.f32 0.03125, %v1241_v25 }
 0x6fe   : >> { %v1244_v27 = vsub.f32 %v1234_v20, %v1243_v26 }
 0x700   : >> { %v1245_v28 = vmul.f32 %v1244_v27, %v1244_v27 }
 0x702   : >> { %v1246_v29 = vsel %vm647_vm4, %v1245_v28, 0.0 }
 0x703   : >> { %1247 = vadd.xlane.f32.xlu1 %v1246_v29 }
 0x78c   : >> { %v1248_v33 = vpop.xlane.xlu1 %1247 }
 0x78d   : >> { %v1249_v34 = vmul.f32 0.03125, %v1248_v33 }
 0x78f   : >> { %v1250_v35 = vadd.f32 1e-05, %v1249_v34 }
 0x791   : >> { %1852 = vrsqrt.f32 %v1250_v35 }
 0x79e   : >> { %v1853_v36 = vpop.eup %1852 }
 0x79f   : >> { %v1252_v38 = vmul.f32 %v1853_v36, %v1244_v27 }
 0x7a1   : >> { %v1259_v23 = vmul.f32 %v1596_v37, %v1252_v38 }
 0x7a3   : >> { %v1266_v40 = vadd.f32 %v1597_v39, %v1259_v23 }
 0x7a5   : >> { %v1267_v41 = vpack.c.bf16 %v1266_v40, %v1266_v40 }
 0x7a7   : >> { %1734 = vmatmul.mubr.msk.bf16.vlgmr.msra.gmra.mxu0 %vm647_vm4, %v1267_v41 }
 0x867   : >> { %v1331_v45 = vpop.f32.mrf.mxu0 }
 0x868   : >> { %v1332_v46 = vadd.f32 %v1599_v44, %v1331_v45 }
 0x869   : >> { %v1735_v47 = vpop.f32.mrf.mxu0 }
 0x86a   : >> { %v1337_v48 = vmax.f32 %v1332_v46, 0.0 }
 0x86b   : >> { %v1334_v49 = vpop.f32.mrf.mxu0 }
 0x86c   : >> { %v1338_v50 = vpack.c.bf16 %v1337_v48, %v1337_v48 }
 0x86d   : >> { %v1736_v51 = vpop.f32.mrf.mxu0 }
 0x86e   : >> { %1746 = vmatmul.mubr.msk.bf16.vlgmr.msra.gmra.mxu1 %vm1382_vm9, %v1338_v50 }
 0x92e   : >> { %v1420_v52 = vpop.f32.mrf.mxu1 }
 0x92f   : >> { %v1421_v53 = vadd.f32 %v1605_v15, %v1420_v52 }
 0x930   : >> { %v1747_v54 = vpop.f32.mrf.mxu1 }
 0x931   : >> { %v1426_v55 = vadd.f32 %v1421_v53, %v1266_v40 }
 0x932   : >> { %v1423_v56 = vpop.f32.mrf.mxu1 }
 0x933   : >> { %v1431_v57 = vsel %vm647_vm4, %v1426_v55, 0.0 }
 0x934   : >> { %1432 = vadd.xlane.f32.xlu0 %v1431_v57  ;;  %v1748_v58 = vpop.f32.mrf.mxu1 }
 0x9bd   : >> { %v1433_v59 = vpop.xlane.xlu0 %1432 }
 0x9be   : >> { %v1434_v60 = vmul.f32 0.03125, %v1433_v59 }
 0x9c0   : >> { %v1435_v61 = vsub.f32 %v1426_v55, %v1434_v60 }
 0x9c2   : >> { %v1436_v62 = vmul.f32 %v1435_v61, %v1435_v61 }
 0x9c4   : >> { %v1437_v63 = vsel %vm647_vm4, %v1436_v62, 0.0 }
 0x9c5   : >> { %1438 = vadd.xlane.f32.xlu0 %v1437_v63 }
 0xa4e   : >> { %v1439_v0 = vpop.xlane.xlu0 %1438 }
 0xa4f   : >> { %v1440_v1 = vmul.f32 0.03125, %v1439_v0 }
 0xa51   : >> { %v1441_v2 = vadd.f32 1e-05, %v1440_v1 }
 0xa53   : >> { %1854 = vrsqrt.f32 %v1441_v2 }
 0xa60   : >> { %v1855_v3 = vpop.eup %1854 }
 0xa61   : >> { %v1443_v5 = vmul.f32 %v1855_v3, %v1435_v61 }
 0xa63   : >> { %v1450_v8 = vmul.f32 %v1611_v4, %v1443_v5  ;;  %616 = sbr.rel (!%p614_p11) target bundleno = 239 (0xef), region = 141 }
 0xa65   : >> { %v1457_v9 = vadd.f32 %v1612_v6, %v1450_v8  }
 0xa67   : >> { %v2354_v11 = vmov %v1457_v9  ;;  %1459 = vst.msk [vmem:[%s2355_s28] sm:$0xff] (%p614_p11), %vm647_vm4, %v1457_v9 }
 0xa68   : > { %1869 = shalt.err (!%p1866_p4)
}
 0xa69   : > { %s1870_s25 = scalar_lea.hbm %s1472_s23, 128  ;;  %s1874_s21 = scalar_lea.hbm %s2332_s16, 256 }
 0xa6a   : > { %p1871_p7 = scmp.ne.s32.totalorder %s1472_s23, %s1870_s25  ;;  %p1875_p10 = scmp.lt.s32.totalorder %s1472_s23, %s2332_s16 }
 0xa6b   : > { %p1876_p11 = scmp.lt.s32.totalorder %s1874_s21, %s1870_s25 }
 0xa6c   : > { %p1872_p8 = pnand %p1871_p7, %p2077_p5 }
 0xa6d   : > { %p1877_p12 = por %p1876_p11, %p1875_p10 }
 0xa6e   : > { %p1873_p9 = pneg %p1872_p8 }
 0xa70   : > { %p1878_p13 = pnand %p1877_p12, %p1873_p9 }
 0xa72   : > { %1881 = shalt.err (!%p1878_p13)
}
 0xa73   : > { %1749 = dma.vmem_to_hbm [thread:$0]  (%p2077_p5), %s1475_s17, 128, %s1472_s23, %s1461_s27  }
 0xa74 PF: > { %s2358_s1 = sld [smem:[#allocation7_spill]] }
 0xa75   : > { %s2359_s2 = sld [smem:[#allocation5_spill]] }
 0xa7a   : > { %p1755_p0 = scmp.ge.s32.totalorder %s2358_s1, 2 }
 0xa7b   : > { %s1486_s20 = sand.u32 1, %s2359_s2  }
 0xa7c   : > { %p1752_p1 = pnand %p1755_p0, %p2081_p6  ;;  %s1487_s24 = scalar_lea.sflag [#allocation3], %s1486_s20 }
 0xa7e   : > { %p1753_p2 = pneg %p1752_p1 }
 0xa80   : > { %1907 = dma.done.wait (%p1753_p2), %s1487_s24, 128  }
 0xa81   : > { %1909 = vsyncadd (%p1753_p2), %s1487_s24, 4294967168  ;;  %s2361_s24 = sld [smem:[#allocation8_spill]]  ;;  %s2364_s21 = smov %s1916_s22 }
 0xa82   : > { %s2362_s26 = sld [smem:[#allocation6_spill]] }
 0xa83   : > { %s2363_s23 = sld [smem:[#allocation9_spill]] }
 0xa87   : > { %p26_p3 = scmp.ge.s32.totalorder %s2361_s24, 4  }
 0xa88   : > { %s2365_s22 = smov %s2362_s26 }
 0xa89   :  { %28 = sbr.rel (!%p26_p3) target bundleno = 7 (0x7), region = 152 }
 0xa8e   :  { %1492 = vsyncpa [#allocation3], 1 }
 0xa8f   :  { %1494 = vsyncpa [#allocation3 + $0x1], 1 }

</bundles_post_ra>
